<compile_context>
chip_gen: v7x
topology: tpu7x:2x2x1
jax: 0.10.0
libtpu: 0.0.40
codegen_flags: <defaults>
</compile_context>

<pallas_src>
import functools

import jax
import jax.numpy as jnp
import numpy as np
from jax.experimental import pallas as pl
from jax.experimental.pallas import tpu as pltpu  # noqa: F401  (TPU backend assumed)

PAD = 128  # lane-dense padding of the combined class axis (sum of classes = 24)


# ---------------------------------------------------------------------------
# Fused kernel:
#   scores = sum(tanh(x) * w_att, -1)        (VPU, bias dropped: softmax-invariant)
#   att    = softmax(scores, axis=1)
#   pooled = sum(att * x, axis=1)            -> (B, D)
#   z      = pooled @ Wcat                   -> (B, 128) one MXU matmul, all heads
#   k      = (gamma*z + r)**degree + Bcat
#   out    = per-head (segment-masked) log_softmax, one lane-dense (B,128) store
# ---------------------------------------------------------------------------
def _fused_kernel(x_ref, w_att_ref, wcat_ref, bcat_ref, out_ref,
                  *, gamma, r, degree, offsets, sizes):
    x = x_ref[...]                                                  # (B, S, D)
    w = w_att_ref[...]                                              # (1, D)

    # ---- attention pooling over the sequence axis (VPU/XLU/EUP only) ------
    # scalar Linear(D,1) bias omitted: uniform over S, cancels in softmax(dim=1)
    scores = jnp.sum(jnp.tanh(x) * w, axis=-1, keepdims=True)       # (B, S, 1)
    m = jnp.max(scores, axis=1, keepdims=True)
    e = jnp.exp(scores - m)
    att = e / jnp.sum(e, axis=1, keepdims=True)                     # softmax over S
    pooled = jnp.sum(att * x, axis=1)                               # (B, D)

    # ---- all six PolySVM heads as one lane-padded matmul -------------------
    z = jnp.dot(pooled, wcat_ref[...],
                preferred_element_type=jnp.float32)                 # (B, PAD)
    k = (gamma * z + r) ** degree + bcat_ref[...]                   # (B, PAD)

    # ---- per-head log_softmax via static segment masks ---------------------
    col = jax.lax.broadcasted_iota(jnp.int32, (1, PAD), 1)          # (1, PAD)
    out = k
    for off, c in zip(offsets, sizes):                              # static unroll (6 heads)
        msk = jnp.logical_and(col >= off, col < off + c)            # compile-time const
        kh = jnp.where(msk, k, -jnp.inf)
        mh = jnp.max(kh, axis=-1, keepdims=True)                    # (B, 1)
        eh = jnp.exp(jnp.where(msk, k - mh, -jnp.inf))
        lse = jnp.log(jnp.sum(eh, axis=-1, keepdims=True))          # (B, 1)
        out = jnp.where(msk, k - mh - lse, out)
    out_ref[...] = out                                              # single lane-dense store


# ---------------------------------------------------------------------------
# Host-side packing: concatenate + pre-transpose head weights/biases, zero-pad
# the class axis to PAD=128 lanes.
# ---------------------------------------------------------------------------
def _pack_heads(head_params):
    names = list(head_params.keys())
    offsets, sizes, w_cols, b_cols = [], [], [], []
    off = 0
    for name in names:
        W, b = head_params[name]                # W: (C, D)  b: (1, C)
        C = W.shape[0]
        offsets.append(off)
        sizes.append(C)
        w_cols.append(W.T)                      # pre-transposed: (D, C)
        b_cols.append(b)
        off += C
    assert off <= PAD
    Wcat = jnp.pad(jnp.concatenate(w_cols, axis=1), ((0, 0), (0, PAD - off)))
    Bcat = jnp.pad(jnp.concatenate(b_cols, axis=1), ((0, 0), (0, PAD - off)))
    return names, tuple(offsets), tuple(sizes), Wcat, Bcat


def multi_task_svm_forward(embedded_vision, w_att, b_att, head_params,
                           gamma, r, degree):
    # b_att (the Linear(D,1) bias) shifts all S scores uniformly and cancels in
    # the softmax over the sequence axis; accepted for API parity, not used.
    del b_att
    B, S, D = embedded_vision.shape
    names, offsets, sizes, Wcat, Bcat = _pack_heads(head_params)
    kern = functools.partial(_fused_kernel, gamma=gamma, r=r, degree=degree,
                             offsets=offsets, sizes=sizes)
    slab = pl.pallas_call(
        kern,
        out_shape=jax.ShapeDtypeStruct((B, PAD), jnp.float32),
    )(embedded_vision, w_att, Wcat, Bcat)
    # slice the lane-dense slab back into per-head logits (cheap host-level slices)
    return {n: slab[:, o:o + c] for n, o, c in zip(names, offsets, sizes)}


# ---------------------------------------------------------------------------
# Pure-JAX reference for validation (includes the attention bias explicitly)
# ---------------------------------------------------------------------------
def reference_forward(embedded_vision, w_att, b_att, head_params,
                      gamma, r, degree):
    scores = jnp.tanh(embedded_vision) @ w_att.T + b_att[0, 0]      # (B, S, 1)
    att = jax.nn.softmax(scores, axis=1)
    pooled = jnp.sum(att * embedded_vision, axis=1)                 # (B, D)
    logits = {}
    for name, (W, b) in head_params.items():
        z = pooled @ W.T
        k = (gamma * z + r) ** degree + b
        logits[name] = jax.nn.log_softmax(k, axis=-1)
    return logits


if __name__ == "__main__":
    # config: intermediate_dims=32, kernel_type='poly', gamma=0.1, r=1.0, degree=2
    B, S, D = 2, 8, 32
    gamma, r, degree = 0.1, 1.0, 2
    head_classes = {
        "head_age": 6, "head_race": 3, "head_masked": 2,
        "head_skintone": 4, "head_emotion": 7, "head_gender": 2,
    }

    key = jax.random.PRNGKey(0)
    keys = jax.random.split(key, 2 + len(head_classes))

    # stand-in for the vision backbone output (see TODO above)
    embedded_vision = jax.random.normal(keys[0], (B, S, D), jnp.float32)

    # attention_weights = nn.Linear(D, 1): weight (1, D), bias (1,)
    w_att = jax.random.normal(keys[1], (1, D), jnp.float32) * 0.1
    b_att = jnp.zeros((1, 1), jnp.float32)

    # PolySVM heads: weights = torch.randn(C, D), bias = torch.zeros(C)
    head_params = {}
    for i, (name, C) in enumerate(head_classes.items()):
        W = jax.random.normal(keys[2 + i], (C, D), jnp.float32)
        b = jnp.zeros((1, C), jnp.float32)
        head_params[name] = (W, b)

    logits = multi_task_svm_forward(embedded_vision, w_att, b_att, head_params,
                                    gamma, r, degree)
    logits = jax.tree.map(jax.block_until_ready, logits)

    ref = reference_forward(embedded_vision, w_att, b_att, head_params,
                            gamma, r, degree)
    for name in head_classes:
        np.testing.assert_allclose(np.asarray(logits[name]),
                                   np.asarray(ref[name]),
                                   rtol=1e-5, atol=1e-5)
        assert logits[name].shape == (B, head_classes[name])

    print("KERNEL_OK")
</pallas_src>

<mosaic_0001>
module attributes {stable_mosaic.version = 11 : i64} {
  func.func @_fused_kernel(%arg0: memref<2x8x32xf32, #tpu.memory_space<vmem>>, %arg1: memref<1x32xf32, #tpu.memory_space<vmem>>, %arg2: memref<32x128xf32, #tpu.memory_space<vmem>>, %arg3: memref<1x128xf32, #tpu.memory_space<vmem>>, %arg4: memref<2x128xf32, #tpu.memory_space<vmem>>) attributes {dimension_semantics = [], scalar_prefetch = 0 : i64, scratch_operands = 0 : i64, tpu.core_type = #tpu.core_type<tc>} {
    %c0 = arith.constant 0 : index
    %c0_0 = arith.constant 0 : index
    %c0_1 = arith.constant 0 : index
    %0 = vector.load %arg0[%c0, %c0_0, %c0_1] : memref<2x8x32xf32, #tpu.memory_space<vmem>>, vector<2x8x32xf32>
    %c0_2 = arith.constant 0 : index
    %c0_3 = arith.constant 0 : index
    %1 = vector.load %arg1[%c0_2, %c0_3] : memref<1x32xf32, #tpu.memory_space<vmem>>, vector<1x32xf32>
    %2 = math.tanh %0 : vector<2x8x32xf32>
    %3 = vector.shape_cast %1 : vector<1x32xf32> to vector<1x1x32xf32>
    %4 = vector.broadcast %3 : vector<1x1x32xf32> to vector<2x8x32xf32>
    %5 = arith.mulf %2, %4 : vector<2x8x32xf32>
    %cst = arith.constant dense<0.000000e+00> : vector<2x8xf32>
    %6 = vector.multi_reduction <add>, %5, %cst [2] : vector<2x8x32xf32> to vector<2x8xf32>
    %7 = vector.shape_cast %6 : vector<2x8xf32> to vector<2x8x1xf32>
    %cst_4 = arith.constant dense<0xFF800000> : vector<2x1xf32>
    %8 = vector.multi_reduction <maximumf>, %7, %cst_4 [1] : vector<2x8x1xf32> to vector<2x1xf32>
    %9 = vector.shape_cast %8 : vector<2x1xf32> to vector<2x1x1xf32>
    %10 = vector.broadcast %9 : vector<2x1x1xf32> to vector<2x8x1xf32>
    %11 = arith.subf %7, %10 : vector<2x8x1xf32>
    %12 = math.exp %11 : vector<2x8x1xf32>
    %cst_5 = arith.constant dense<0.000000e+00> : vector<2x1xf32>
    %13 = vector.multi_reduction <add>, %12, %cst_5 [1] : vector<2x8x1xf32> to vector<2x1xf32>
    %14 = vector.shape_cast %13 : vector<2x1xf32> to vector<2x1x1xf32>
    %15 = vector.broadcast %14 : vector<2x1x1xf32> to vector<2x8x1xf32>
    %16 = arith.divf %12, %15 : vector<2x8x1xf32>
    %17 = vector.broadcast %16 : vector<2x8x1xf32> to vector<2x8x32xf32>
    %18 = arith.mulf %17, %0 : vector<2x8x32xf32>
    %cst_6 = arith.constant dense<0.000000e+00> : vector<2x32xf32>
    %19 = vector.multi_reduction <add>, %18, %cst_6 [1] : vector<2x8x32xf32> to vector<2x32xf32>
    %c0_7 = arith.constant 0 : index
    %c0_8 = arith.constant 0 : index
    %20 = vector.load %arg2[%c0_7, %c0_8] : memref<32x128xf32, #tpu.memory_space<vmem>>, vector<32x128xf32>
    %cst_9 = arith.constant dense<0.000000e+00> : vector<2x128xf32>
    %21 = tpu.matmul %19, %20, %cst_9 {dimension_numbers = #tpu.dot_dimension_numbers<[1], [0], [0], [1], [0, 0, 1, 1], [], []>} : vector<2x32xf32>, vector<32x128xf32>, vector<2x128xf32> -> vector<2x128xf32>
    %cst_10 = arith.constant 1.000000e-01 : f32
    %22 = vector.broadcast %cst_10 : f32 to vector<2x128xf32>
    %23 = arith.mulf %22, %21 : vector<2x128xf32>
    %cst_11 = arith.constant 1.000000e+00 : f32
    %24 = vector.broadcast %cst_11 : f32 to vector<2x128xf32>
    %25 = arith.addf %23, %24 : vector<2x128xf32>
    %26 = arith.mulf %25, %25 : vector<2x128xf32>
    %c0_12 = arith.constant 0 : index
    %c0_13 = arith.constant 0 : index
    %27 = vector.load %arg3[%c0_12, %c0_13] : memref<1x128xf32, #tpu.memory_space<vmem>>, vector<1x128xf32>
    %28 = vector.broadcast %27 : vector<1x128xf32> to vector<2x128xf32>
    %29 = arith.addf %26, %28 : vector<2x128xf32>
    %30 = tpu.iota {dimensions = array<i32: 1>} : vector<1x128xi32>
    %c0_i32 = arith.constant 0 : i32
    %31 = vector.broadcast %c0_i32 : i32 to vector<1x128xi32>
    %32 = arith.cmpi sge, %30, %31 : vector<1x128xi32>
    %c6_i32 = arith.constant 6 : i32
    %33 = vector.broadcast %c6_i32 : i32 to vector<1x128xi32>
    %34 = arith.cmpi slt, %30, %33 : vector<1x128xi32>
    %35 = arith.andi %32, %34 : vector<1x128xi1>
    %cst_14 = arith.constant 0xFF800000 : f32
    %36 = vector.shape_cast %35 : vector<1x128xi1> to vector<1x128xi1>
    %37 = vector.broadcast %36 : vector<1x128xi1> to vector<2x128xi1>
    %38 = vector.broadcast %cst_14 : f32 to vector<2x128xf32>
    %39 = arith.select %37, %29, %38 : vector<2x128xi1>, vector<2x128xf32>
    %cst_15 = arith.constant dense<0xFF800000> : vector<2xf32>
    %40 = vector.multi_reduction <maximumf>, %39, %cst_15 [1] : vector<2x128xf32> to vector<2xf32>
    %41 = vector.shape_cast %40 : vector<2xf32> to vector<2x1xf32>
    %42 = vector.broadcast %41 : vector<2x1xf32> to vector<2x128xf32>
    %43 = arith.subf %29, %42 : vector<2x128xf32>
    %cst_16 = arith.constant 0xFF800000 : f32
    %44 = vector.shape_cast %35 : vector<1x128xi1> to vector<1x128xi1>
    %45 = vector.broadcast %44 : vector<1x128xi1> to vector<2x128xi1>
    %46 = vector.broadcast %cst_16 : f32 to vector<2x128xf32>
    %47 = arith.select %45, %43, %46 : vector<2x128xi1>, vector<2x128xf32>
    %48 = math.exp %47 : vector<2x128xf32>
    %cst_17 = arith.constant dense<0.000000e+00> : vector<2xf32>
    %49 = vector.multi_reduction <add>, %48, %cst_17 [1] : vector<2x128xf32> to vector<2xf32>
    %50 = vector.shape_cast %49 : vector<2xf32> to vector<2x1xf32>
    %51 = math.log %50 : vector<2x1xf32>
    %52 = vector.broadcast %41 : vector<2x1xf32> to vector<2x128xf32>
    %53 = arith.subf %29, %52 : vector<2x128xf32>
    %54 = vector.broadcast %51 : vector<2x1xf32> to vector<2x128xf32>
    %55 = arith.subf %53, %54 : vector<2x128xf32>
    %56 = vector.shape_cast %35 : vector<1x128xi1> to vector<1x128xi1>
    %57 = vector.broadcast %56 : vector<1x128xi1> to vector<2x128xi1>
    %58 = arith.select %57, %55, %29 : vector<2x128xi1>, vector<2x128xf32>
    %c6_i32_18 = arith.constant 6 : i32
    %59 = vector.broadcast %c6_i32_18 : i32 to vector<1x128xi32>
    %60 = arith.cmpi sge, %30, %59 : vector<1x128xi32>
    %c9_i32 = arith.constant 9 : i32
    %61 = vector.broadcast %c9_i32 : i32 to vector<1x128xi32>
    %62 = arith.cmpi slt, %30, %61 : vector<1x128xi32>
    %63 = arith.andi %60, %62 : vector<1x128xi1>
    %cst_19 = arith.constant 0xFF800000 : f32
    %64 = vector.shape_cast %63 : vector<1x128xi1> to vector<1x128xi1>
    %65 = vector.broadcast %64 : vector<1x128xi1> to vector<2x128xi1>
    %66 = vector.broadcast %cst_19 : f32 to vector<2x128xf32>
    %67 = arith.select %65, %29, %66 : vector<2x128xi1>, vector<2x128xf32>
    %cst_20 = arith.constant dense<0xFF800000> : vector<2xf32>
    %68 = vector.multi_reduction <maximumf>, %67, %cst_20 [1] : vector<2x128xf32> to vector<2xf32>
    %69 = vector.shape_cast %68 : vector<2xf32> to vector<2x1xf32>
    %70 = vector.broadcast %69 : vector<2x1xf32> to vector<2x128xf32>
    %71 = arith.subf %29, %70 : vector<2x128xf32>
    %cst_21 = arith.constant 0xFF800000 : f32
    %72 = vector.shape_cast %63 : vector<1x128xi1> to vector<1x128xi1>
    %73 = vector.broadcast %72 : vector<1x128xi1> to vector<2x128xi1>
    %74 = vector.broadcast %cst_21 : f32 to vector<2x128xf32>
    %75 = arith.select %73, %71, %74 : vector<2x128xi1>, vector<2x128xf32>
    %76 = math.exp %75 : vector<2x128xf32>
    %cst_22 = arith.constant dense<0.000000e+00> : vector<2xf32>
    %77 = vector.multi_reduction <add>, %76, %cst_22 [1] : vector<2x128xf32> to vector<2xf32>
    %78 = vector.shape_cast %77 : vector<2xf32> to vector<2x1xf32>
    %79 = math.log %78 : vector<2x1xf32>
    %80 = vector.broadcast %69 : vector<2x1xf32> to vector<2x128xf32>
    %81 = arith.subf %29, %80 : vector<2x128xf32>
    %82 = vector.broadcast %79 : vector<2x1xf32> to vector<2x128xf32>
    %83 = arith.subf %81, %82 : vector<2x128xf32>
    %84 = vector.shape_cast %63 : vector<1x128xi1> to vector<1x128xi1>
    %85 = vector.broadcast %84 : vector<1x128xi1> to vector<2x128xi1>
    %86 = arith.select %85, %83, %58 : vector<2x128xi1>, vector<2x128xf32>
    %c9_i32_23 = arith.constant 9 : i32
    %87 = vector.broadcast %c9_i32_23 : i32 to vector<1x128xi32>
    %88 = arith.cmpi sge, %30, %87 : vector<1x128xi32>
    %c11_i32 = arith.constant 11 : i32
    %89 = vector.broadcast %c11_i32 : i32 to vector<1x128xi32>
    %90 = arith.cmpi slt, %30, %89 : vector<1x128xi32>
    %91 = arith.andi %88, %90 : vector<1x128xi1>
    %cst_24 = arith.constant 0xFF800000 : f32
    %92 = vector.shape_cast %91 : vector<1x128xi1> to vector<1x128xi1>
    %93 = vector.broadcast %92 : vector<1x128xi1> to vector<2x128xi1>
    %94 = vector.broadcast %cst_24 : f32 to vector<2x128xf32>
    %95 = arith.select %93, %29, %94 : vector<2x128xi1>, vector<2x128xf32>
    %cst_25 = arith.constant dense<0xFF800000> : vector<2xf32>
    %96 = vector.multi_reduction <maximumf>, %95, %cst_25 [1] : vector<2x128xf32> to vector<2xf32>
    %97 = vector.shape_cast %96 : vector<2xf32> to vector<2x1xf32>
    %98 = vector.broadcast %97 : vector<2x1xf32> to vector<2x128xf32>
    %99 = arith.subf %29, %98 : vector<2x128xf32>
    %cst_26 = arith.constant 0xFF800000 : f32
    %100 = vector.shape_cast %91 : vector<1x128xi1> to vector<1x128xi1>
    %101 = vector.broadcast %100 : vector<1x128xi1> to vector<2x128xi1>
    %102 = vector.broadcast %cst_26 : f32 to vector<2x128xf32>
    %103 = arith.select %101, %99, %102 : vector<2x128xi1>, vector<2x128xf32>
    %104 = math.exp %103 : vector<2x128xf32>
    %cst_27 = arith.constant dense<0.000000e+00> : vector<2xf32>
    %105 = vector.multi_reduction <add>, %104, %cst_27 [1] : vector<2x128xf32> to vector<2xf32>
    %106 = vector.shape_cast %105 : vector<2xf32> to vector<2x1xf32>
    %107 = math.log %106 : vector<2x1xf32>
    %108 = vector.broadcast %97 : vector<2x1xf32> to vector<2x128xf32>
    %109 = arith.subf %29, %108 : vector<2x128xf32>
    %110 = vector.broadcast %107 : vector<2x1xf32> to vector<2x128xf32>
    %111 = arith.subf %109, %110 : vector<2x128xf32>
    %112 = vector.shape_cast %91 : vector<1x128xi1> to vector<1x128xi1>
    %113 = vector.broadcast %112 : vector<1x128xi1> to vector<2x128xi1>
    %114 = arith.select %113, %111, %86 : vector<2x128xi1>, vector<2x128xf32>
    %c11_i32_28 = arith.constant 11 : i32
    %115 = vector.broadcast %c11_i32_28 : i32 to vector<1x128xi32>
    %116 = arith.cmpi sge, %30, %115 : vector<1x128xi32>
    %c15_i32 = arith.constant 15 : i32
    %117 = vector.broadcast %c15_i32 : i32 to vector<1x128xi32>
    %118 = arith.cmpi slt, %30, %117 : vector<1x128xi32>
    %119 = arith.andi %116, %118 : vector<1x128xi1>
    %cst_29 = arith.constant 0xFF800000 : f32
    %120 = vector.shape_cast %119 : vector<1x128xi1> to vector<1x128xi1>
    %121 = vector.broadcast %120 : vector<1x128xi1> to vector<2x128xi1>
    %122 = vector.broadcast %cst_29 : f32 to vector<2x128xf32>
    %123 = arith.select %121, %29, %122 : vector<2x128xi1>, vector<2x128xf32>
    %cst_30 = arith.constant dense<0xFF800000> : vector<2xf32>
    %124 = vector.multi_reduction <maximumf>, %123, %cst_30 [1] : vector<2x128xf32> to vector<2xf32>
    %125 = vector.shape_cast %124 : vector<2xf32> to vector<2x1xf32>
    %126 = vector.broadcast %125 : vector<2x1xf32> to vector<2x128xf32>
    %127 = arith.subf %29, %126 : vector<2x128xf32>
    %cst_31 = arith.constant 0xFF800000 : f32
    %128 = vector.shape_cast %119 : vector<1x128xi1> to vector<1x128xi1>
    %129 = vector.broadcast %128 : vector<1x128xi1> to vector<2x128xi1>
    %130 = vector.broadcast %cst_31 : f32 to vector<2x128xf32>
    %131 = arith.select %129, %127, %130 : vector<2x128xi1>, vector<2x128xf32>
    %132 = math.exp %131 : vector<2x128xf32>
    %cst_32 = arith.constant dense<0.000000e+00> : vector<2xf32>
    %133 = vector.multi_reduction <add>, %132, %cst_32 [1] : vector<2x128xf32> to vector<2xf32>
    %134 = vector.shape_cast %133 : vector<2xf32> to vector<2x1xf32>
    %135 = math.log %134 : vector<2x1xf32>
    %136 = vector.broadcast %125 : vector<2x1xf32> to vector<2x128xf32>
    %137 = arith.subf %29, %136 : vector<2x128xf32>
    %138 = vector.broadcast %135 : vector<2x1xf32> to vector<2x128xf32>
    %139 = arith.subf %137, %138 : vector<2x128xf32>
    %140 = vector.shape_cast %119 : vector<1x128xi1> to vector<1x128xi1>
    %141 = vector.broadcast %140 : vector<1x128xi1> to vector<2x128xi1>
    %142 = arith.select %141, %139, %114 : vector<2x128xi1>, vector<2x128xf32>
    %c15_i32_33 = arith.constant 15 : i32
    %143 = vector.broadcast %c15_i32_33 : i32 to vector<1x128xi32>
    %144 = arith.cmpi sge, %30, %143 : vector<1x128xi32>
    %c22_i32 = arith.constant 22 : i32
    %145 = vector.broadcast %c22_i32 : i32 to vector<1x128xi32>
    %146 = arith.cmpi slt, %30, %145 : vector<1x128xi32>
    %147 = arith.andi %144, %146 : vector<1x128xi1>
    %cst_34 = arith.constant 0xFF800000 : f32
    %148 = vector.shape_cast %147 : vector<1x128xi1> to vector<1x128xi1>
    %149 = vector.broadcast %148 : vector<1x128xi1> to vector<2x128xi1>
    %150 = vector.broadcast %cst_34 : f32 to vector<2x128xf32>
    %151 = arith.select %149, %29, %150 : vector<2x128xi1>, vector<2x128xf32>
    %cst_35 = arith.constant dense<0xFF800000> : vector<2xf32>
    %152 = vector.multi_reduction <maximumf>, %151, %cst_35 [1] : vector<2x128xf32> to vector<2xf32>
    %153 = vector.shape_cast %152 : vector<2xf32> to vector<2x1xf32>
    %154 = vector.broadcast %153 : vector<2x1xf32> to vector<2x128xf32>
    %155 = arith.subf %29, %154 : vector<2x128xf32>
    %cst_36 = arith.constant 0xFF800000 : f32
    %156 = vector.shape_cast %147 : vector<1x128xi1> to vector<1x128xi1>
    %157 = vector.broadcast %156 : vector<1x128xi1> to vector<2x128xi1>
    %158 = vector.broadcast %cst_36 : f32 to vector<2x128xf32>
    %159 = arith.select %157, %155, %158 : vector<2x128xi1>, vector<2x128xf32>
    %160 = math.exp %159 : vector<2x128xf32>
    %cst_37 = arith.constant dense<0.000000e+00> : vector<2xf32>
    %161 = vector.multi_reduction <add>, %160, %cst_37 [1] : vector<2x128xf32> to vector<2xf32>
    %162 = vector.shape_cast %161 : vector<2xf32> to vector<2x1xf32>
    %163 = math.log %162 : vector<2x1xf32>
    %164 = vector.broadcast %153 : vector<2x1xf32> to vector<2x128xf32>
    %165 = arith.subf %29, %164 : vector<2x128xf32>
    %166 = vector.broadcast %163 : vector<2x1xf32> to vector<2x128xf32>
    %167 = arith.subf %165, %166 : vector<2x128xf32>
    %168 = vector.shape_cast %147 : vector<1x128xi1> to vector<1x128xi1>
    %169 = vector.broadcast %168 : vector<1x128xi1> to vector<2x128xi1>
    %170 = arith.select %169, %167, %142 : vector<2x128xi1>, vector<2x128xf32>
    %c22_i32_38 = arith.constant 22 : i32
    %171 = vector.broadcast %c22_i32_38 : i32 to vector<1x128xi32>
    %172 = arith.cmpi sge, %30, %171 : vector<1x128xi32>
    %c24_i32 = arith.constant 24 : i32
    %173 = vector.broadcast %c24_i32 : i32 to vector<1x128xi32>
    %174 = arith.cmpi slt, %30, %173 : vector<1x128xi32>
    %175 = arith.andi %172, %174 : vector<1x128xi1>
    %cst_39 = arith.constant 0xFF800000 : f32
    %176 = vector.shape_cast %175 : vector<1x128xi1> to vector<1x128xi1>
    %177 = vector.broadcast %176 : vector<1x128xi1> to vector<2x128xi1>
    %178 = vector.broadcast %cst_39 : f32 to vector<2x128xf32>
    %179 = arith.select %177, %29, %178 : vector<2x128xi1>, vector<2x128xf32>
    %cst_40 = arith.constant dense<0xFF800000> : vector<2xf32>
    %180 = vector.multi_reduction <maximumf>, %179, %cst_40 [1] : vector<2x128xf32> to vector<2xf32>
    %181 = vector.shape_cast %180 : vector<2xf32> to vector<2x1xf32>
    %182 = vector.broadcast %181 : vector<2x1xf32> to vector<2x128xf32>
    %183 = arith.subf %29, %182 : vector<2x128xf32>
    %cst_41 = arith.constant 0xFF800000 : f32
    %184 = vector.shape_cast %175 : vector<1x128xi1> to vector<1x128xi1>
    %185 = vector.broadcast %184 : vector<1x128xi1> to vector<2x128xi1>
    %186 = vector.broadcast %cst_41 : f32 to vector<2x128xf32>
    %187 = arith.select %185, %183, %186 : vector<2x128xi1>, vector<2x128xf32>
    %188 = math.exp %187 : vector<2x128xf32>
    %cst_42 = arith.constant dense<0.000000e+00> : vector<2xf32>
    %189 = vector.multi_reduction <add>, %188, %cst_42 [1] : vector<2x128xf32> to vector<2xf32>
    %190 = vector.shape_cast %189 : vector<2xf32> to vector<2x1xf32>
    %191 = math.log %190 : vector<2x1xf32>
    %192 = vector.broadcast %181 : vector<2x1xf32> to vector<2x128xf32>
    %193 = arith.subf %29, %192 : vector<2x128xf32>
    %194 = vector.broadcast %191 : vector<2x1xf32> to vector<2x128xf32>
    %195 = arith.subf %193, %194 : vector<2x128xf32>
    %196 = vector.shape_cast %175 : vector<1x128xi1> to vector<1x128xi1>
    %197 = vector.broadcast %196 : vector<1x128xi1> to vector<2x128xi1>
    %198 = arith.select %197, %195, %170 : vector<2x128xi1>, vector<2x128xf32>
    %c0_43 = arith.constant 0 : index
    %c0_44 = arith.constant 0 : index
    %199 = vector.load %arg4[%c0_43, %c0_44] : memref<2x128xf32, #tpu.memory_space<vmem>>, vector<2x128xf32>
    tpu.vector_store %arg4[%c0_43, %c0_44], %198 {strides = array<i32>} : memref<2x128xf32, #tpu.memory_space<vmem>>, vector<2x128xf32>,
    return
  }
}

</mosaic_0001>

<bundles_post_ra>
// kernel: tpu_custom_call.1
= control target key start
LH: loop header
LB: loop body
LE: loop exit
PB: predicated region body
PF: predicated region fallthrough
CT: control target
= control target key end

     0   :  { %9 = vsyncpa [#allocation3], 0  ;;  %s696_s0 = inlined_call_operand.hbm [shape: f32[2,8,32], index: 0, kind: input, shape index: {}]   ;;  %s697_s1 = inlined_call_operand.vmem [shape: f32[1,32], index: 1, kind: input, shape index: {}]   ;;  %s698_s2 = inlined_call_operand.hbm [shape: f32[32,128], index: 2, kind: input, shape index: {}]   ;;  %s699_s3 = inlined_call_operand.vmem [shape: f32[1,128], index: 3, kind: input, shape index: {}]   ;;  %s700_s4 = inlined_call_operand.hbm [shape: f32[2,128], index: 4, kind: output, shape index: {}]  }
   0x1   :  { %10 = vsyncpa [#allocation6], 0 }
   0x2   :  { %11 = vsyncpa [#allocation4], 0  ;;  %s488_s15 = smov [#allocation2]   ;;  %s416_s19 = scalar_lea.hbm %s696_s0, 256 }
   0x3   :  { %s17_s16 = sshll.u32 %s488_s15, 4  ;;  %p417_p0 = scmp.ne.s32.totalorder %s696_s0, %s416_s19  ;;  %s18_s16 = int_to_ptr.vmem [resolvable:$true] %s17_s16 }
   0x4   :  { %p420_p1 = scmp.lt.u32.totalorder %s416_s19, %s696_s0 }
   0x6   :  { %p422_p2 = pnand %p420_p1, %p417_p0 }
   0x8   :  { %425 = shalt.err (!%p422_p2)
}
   0x9   :  { %s426_s24 = scalar_lea.vmem %s18_s16, 256  ;;  %p431_p4 = scmp.lt.s32.totalorder %s18_s16, %s18_s16 }
   0xa   :  { %p427_p3 = scmp.ne.s32.totalorder %s18_s16, %s426_s24  ;;  %p432_p5 = scmp.lt.s32.totalorder %s426_s24, %s426_s24 }
   0xc   :  { %p433_p6 = por %p432_p5, %p431_p4 }
   0xe   :  { %p434_p7 = pnand %p433_p6, %p427_p3 }
  0x10   :  { %437 = shalt.err (!%p434_p7)
}
  0x11   :  { %s489_s25 = smov 128   ;;  %s490_s26 = smov 8  }
  0x12   :  { %23 = dma.hbm_to_vmem [thread:$0]  %s696_s0, 256, %s18_s16, [#allocation3], %s489_s25, %s489_s25, %s490_s26  }
  0x13   :  { %s491_s29 = smov [#allocation5]   ;;  %s438_s7 = scalar_lea.hbm %s698_s2, 512 }
  0x14   :  { %s31_s30 = sshll.u32 %s491_s29, 4  ;;  %p439_p8 = scmp.ne.s32.totalorder %s698_s2, %s438_s7  ;;  %s32_s30 = int_to_ptr.vmem [resolvable:$true] %s31_s30 }
  0x15   :  { %p442_p9 = scmp.lt.u32.totalorder %s438_s7, %s698_s2 }
  0x17   :  { %p444_p10 = pnand %p442_p9, %p439_p8 }
  0x19   :  { %447 = shalt.err (!%p444_p10)
}
  0x1a   :  { %s448_s12 = scalar_lea.vmem %s32_s30, 512  ;;  %p453_p12 = scmp.lt.s32.totalorder %s32_s30, %s32_s30 }
  0x1b   :  { %p449_p11 = scmp.ne.s32.totalorder %s32_s30, %s448_s12  ;;  %p454_p13 = scmp.lt.s32.totalorder %s448_s12, %s448_s12 }
  0x1d   :  { %p455_p0 = por %p454_p13, %p453_p12 }
  0x1f   :  { %p456_p1 = pnand %p455_p0, %p449_p11 }
  0x21   :  { %459 = shalt.err (!%p456_p1)
}
  0x22   :  { %37 = dma.hbm_to_vmem [thread:$0]  %s698_s2, 512, %s32_s30, [#allocation6], %s489_s25, %s489_s25, %s490_s26  }
  0x23   :  { %482 = dma.done.wait [#allocation3], 256  }
  0x24   :  { %483 = vsyncadd [#allocation3], 4294967040 }
  0x25   :  { %484 = dma.done.wait [#allocation6], 512  }
  0x26   :  { %485 = vsyncadd [#allocation6], 4294966784  ;;  %v545_v0 = vld [vmem:[#allocation2] sm:$0xff]  ;;  %v547_v1 = vld [vmem:[#allocation2 + $0x8] sm:$0xff]  ;;  %vm59_vm0 = vcmask 261120   ;;  %v492_v12 = vmov 0.0|0.0  }
  0x27   :  { %380 = vtanh.f32 %v545_v0  ;;  %v347_v2 = vld [vmem:[%s697_s1] ss:$0 sm:$0xff]  ;;  %v116_v9 = vld [vmem:[#allocation5] sm:$0xff]  ;;  %v117_v10 = vld [vmem:[#allocation5 + $0x8] sm:$0xff]  ;;  %366 = vmatprep.subr.bf16.mxu0 %v492_v12  ;;  %vm493_vm1 = vmmov 0   ;;  %v494_v15 = vmov 0.0  }
  0x28   :  { %382 = vtanh.f32 %v547_v1  ;;  %v118_v11 = vld [vmem:[#allocation5 + $0x10] sm:$0xff]  ;;  %v367_v13 = vpack.c.bf16 %v117_v10, %v116_v9  ;;  %v119_v14 = vld [vmem:[#allocation5 + $0x18] sm:$0xff]  ;;  %363 = vmatprep.mubr.msk.f32.mxu0 %vm493_vm1, %v494_v15  ;;  %vm122_vm2 = vcmask 1041409   ;;  %vm215_vm11 = vcmask 1041408  }
  0x29   :  { %v370_v16 = vpack.c.bf16 %v119_v14, %v118_v11 }
  0x2a   :  { %368 = vmatpush3.bf16.msra.mxu0 %v367_v13 }
  0x2b   :  { %369 = vmatprep.subr.bf16.mxu0 %v492_v12  ;;  %v349_v12 = vld [vmem:[%s699_s3] ss:$0 sm:$0xff]  ;;  %s495_s3 = smov [#allocation7]  }
  0x2c   :  { %s337_s16 = sshll.u32 %s495_s3, 4  ;;  %s338_s16 = int_to_ptr.vmem [resolvable:$true] %s337_s16 }
  0x2d   :  { %s460_s17 = scalar_lea.vmem %s338_s16, 32  ;;  %p465_p3 = scmp.lt.s32.totalorder %s338_s16, %s338_s16 }
  0x2e   :  { %371 = vmatpush3.bf16.msra.mxu0 %v370_v16  ;;  %p461_p2 = scmp.ne.s32.totalorder %s338_s16, %s460_s17  ;;  %p466_p4 = scmp.lt.s32.totalorder %s460_s17, %s460_s17 }
  0x30   :  { %p467_p5 = por %p466_p4, %p465_p3 }
  0x31   :  { %v381_v3 = vpop.eup %380 }
  0x32   :  { %v383_v4 = vpop.eup %382  ;;  %v57_v5 = vmul.f32 %v381_v3, %v347_v2  ;;  %p468_p6 = pnand %p467_p5, %p461_p2 }
  0x33   :  { %v58_v6 = vmul.f32 %v383_v4, %v347_v2 }
  0x34   :  { %v60_v7 = vsel %vm59_vm0, %v57_v5, 0.0 }
  0x35   :  { %61 = vadd.xlane.f32.xlu0 %v60_v7  ;;  %v63_v8 = vsel %vm59_vm0, %v58_v6, 0.0  ;;  %v207_v7 = vlaneseq }
  0x39   :  { %64 = vadd.xlane.f32.xlu0 %v63_v8  ;;  %v561_v8 = vand.u32 127, %v207_v7 }
  0x3b   :  { %vm250_vm3 = vcmp.ge.s32.totalorder %v561_v8, 9  ;;  %vm251_vm4 = vcmp.lt.s32.totalorder %v561_v8, 11  ;;  %vm290_vm5 = vcmp.ge.s32.totalorder %v561_v8, 15  ;;  %vm291_vm6 = vcmp.lt.s32.totalorder %v561_v8, 22 }
  0x3c   :  { %vm230_vm7 = vcmp.ge.s32.totalorder %v561_v8, 6  ;;  %vm231_vm8 = vcmp.lt.s32.totalorder %v561_v8, 9  ;;  %vm572_vm9 = vmand %vm250_vm3, %vm251_vm4  ;;  %vm210_vm10 = vcmp.lt.s32.totalorder %v561_v8, 6  ;;  %vm270_vm14 = vcmp.ge.s32.totalorder %v561_v8, 11 }
  0x3d   :  { %vm579_vm12 = vmand %vm290_vm5, %vm291_vm6  ;;  %vm271_vm15 = vcmp.lt.s32.totalorder %v561_v8, 15  ;;  %vm310_vm1 = vcmp.ge.s32.totalorder %v561_v8, 22 }
  0x3e   :  { %vm583_vm13 = vmand %vm230_vm7, %vm231_vm8 }
  0xc2   :  { %v62_v17 = vpop.xlane.xlu0 %61 }
  0xc3   :  { %v66_v18 = vrot.slane %v62_v17, 4 }
  0xc5   :  { %v67_v19 = vmax.f32 %v62_v17, %v66_v18 }
  0xc6   :  { %v65_v20 = vpop.xlane.xlu0 %64 }
  0xc7   :  { %v68_v21 = vrot.slane %v67_v19, 2  ;;  %v72_v22 = vrot.slane %v65_v20, 4 }
  0xc9   :  { %v69_v23 = vmax.f32 %v67_v19, %v68_v21  ;;  %v73_v24 = vmax.f32 %v65_v20, %v72_v22 }
  0xcb   :  { %v70_v25 = vrot.slane %v69_v23, 1  ;;  %v74_v26 = vrot.slane %v73_v24, 2 }
  0xcd   :  { %v71_v27 = vmax.f32 %v69_v23, %v70_v25  ;;  %v75_v28 = vmax.f32 %v73_v24, %v74_v26 }
  0xcf   :  { %v78_v29 = vsub.f32 %v62_v17, %v71_v27  ;;  %v76_v30 = vrot.slane %v75_v28, 1 }
  0xd1   :  { %v80_v31 = vmul.f32 1.442695, %v78_v29  ;;  %v77_v32 = vmax.f32 %v75_v28, %v76_v30 }
  0xd3   :  { %384 = vpow2.f32 %v80_v31  ;;  %v79_v33 = vsub.f32 %v65_v20, %v77_v32 }
  0xd5   :  { %v82_v34 = vmul.f32 1.442695, %v79_v33 }
  0xd7   :  { %386 = vpow2.f32 %v82_v34 }
  0xdd   :  { %v385_v35 = vpop.eup %384 }
  0xde   :  { %v84_v36 = vrot.slane %v385_v35, 4 }
  0xe0   :  { %v85_v37 = vadd.f32 %v385_v35, %v84_v36 }
  0xe1   :  { %v387_v38 = vpop.eup %386 }
  0xe2   :  { %v86_v39 = vrot.slane %v85_v37, 2  ;;  %v90_v40 = vrot.slane %v387_v38, 4 }
  0xe4   :  { %v91_v41 = vadd.f32 %v387_v38, %v90_v40  ;;  %v87_v42 = vadd.f32 %v86_v39, %v85_v37 }
  0xe6   :  { %v92_v43 = vrot.slane %v91_v41, 2  ;;  %v88_v44 = vrot.slane %v87_v42, 1 }
  0xe8   :  { %v89_v45 = vadd.f32 %v88_v44, %v87_v42  ;;  %v93_v46 = vadd.f32 %v92_v43, %v91_v41 }
  0xea   :  { %v94_v47 = vrot.slane %v93_v46, 1  ;;  %388 = vrcp.f32 %v89_v45 }
  0xec   :  { %v95_v48 = vadd.f32 %v94_v47, %v93_v46 }
  0xee   :  { %390 = vrcp.f32 %v95_v48 }
  0xf4   :  { %v389_v49 = vpop.eup %388 }
  0xf5   :  { %v97_v50 = vmul.f32 %v389_v49, %v385_v35 }
  0xf7   :  { %v100_v51 = vmul.f32 %v97_v50, %v545_v0 }
  0xf8   :  { %v391_v52 = vpop.eup %390 }
  0xf9   :  { %v99_v53 = vmul.f32 %v391_v52, %v387_v38  ;;  %v102_v54 = vsel %vm59_vm0, %v100_v51, 0.0 }
  0xfa   :  { %v103_v55 = vrot.slane %v102_v54, 4 }
  0xfb   :  { %v101_v56 = vmul.f32 %v99_v53, %v547_v1 }
  0xfc   :  { %v104_v57 = vadd.f32 %v103_v55, %v102_v54 }
  0xfd   :  { %v109_v58 = vsel %vm59_vm0, %v101_v56, 0.0 }
  0xfe   :  { %v105_v59 = vrot.slane %v104_v57, 2  ;;  %v110_v60 = vrot.slane %v109_v58, 4 }
 0x100   :  { %v106_v61 = vadd.f32 %v105_v59, %v104_v57  ;;  %v111_v62 = vadd.f32 %v110_v60, %v109_v58 }
 0x102   :  { %v112_v63 = vrot.slane %v111_v62, 2  ;;  %v107_v2 = vrot.slane %v106_v61, 1 }
 0x104   :  { %v113_v3 = vadd.f32 %v112_v63, %v111_v62  ;;  %v108_v0 = vadd.f32 %v107_v2, %v106_v61 }
 0x106   :  { %v114_v4 = vrot.slane %v113_v3, 1 }
 0x108   :  { %v115_v5 = vadd.f32 %v114_v4, %v113_v3 }
 0x10a   :  { %v123_v6 = vsel %vm122_vm2, %v115_v5, %v108_v0  ;;  %vm311_vm2 = vcmp.lt.s32.totalorder %v561_v8, 24 }
 0x10b   :  { %364 = vmatmul.mubr.msk.f32.vlgmr.msra.gmra.mrb[0].mxu0 %vm59_vm0, %v123_v6  ;;  %vm603_vm0 = vmand %vm270_vm14, %vm271_vm15 }
 0x10c   :  { %vm614_vm3 = vmand %vm310_vm1, %vm311_vm2 }
 0x1de   :  { %v192_v1 = vpop.f32.mrb[0].mxu0 }
 0x1df   :  { %v196_v9 = vmul.f32 0.1, %v192_v1  ;;  %v365_v10 = vpop.f32.mrb[1].mxu0 }
 0x1e1   :  { %v197_v11 = vadd.f32 1.0, %v196_v9 }
 0x1e3   :  { %v198_v13 = vmul.f32 %v197_v11, %v197_v11 }
 0x1e5   :  { %v577_v15 = vadd.f32 %v349_v12, %v198_v13 }
 0x1e7   :  { %v255_v18 = vsel %vm572_vm9, %v577_v15, -inf  ;;  %v214_v19 = vsel %vm210_vm10, %v577_v15, -inf  ;;  %v295_v22 = vsel %vm579_vm12, %v577_v15, -inf  ;;  %v235_v23 = vsel %vm583_vm13, %v577_v15, -inf }
 0x1e8   :  { %v256_v20 = vsel %vm215_vm11, %v255_v18, -inf  ;;  %v216_v21 = vsel %vm215_vm11, %v214_v19, -inf  ;;  %v296_v25 = vsel %vm215_vm11, %v295_v22, -inf  ;;  %v236_v26 = vsel %vm215_vm11, %v235_v23, -inf }
 0x1e9   :  { %257 = vmax.xlane.f32.xlu0 %v256_v20  ;;  %217 = vmax.xlane.f32.xlu1 %v216_v21  ;;  %v275_v27 = vsel %vm603_vm0, %v577_v15, -inf  ;;  %v315_v30 = vsel %vm614_vm3, %v577_v15, -inf }
 0x1ea   :  { %v276_v29 = vsel %vm215_vm11, %v275_v27, -inf  ;;  %v316_v31 = vsel %vm215_vm11, %v315_v30, -inf }
 0x1ed   :  { %297 = vmax.xlane.f32.xlu0 %v296_v25  ;;  %237 = vmax.xlane.f32.xlu1 %v236_v26 }
 0x1f1   :  { %277 = vmax.xlane.f32.xlu1 %v276_v29 }
 0x1f5   :  { %317 = vmax.xlane.f32.xlu1 %v316_v31 }
 0x276   :  { %v258_v32 = vpop.xlane.xlu0 %257  ;;  %v218_v33 = vpop.xlane.xlu1 %217 }
 0x277   :  { %v624_v34 = vsub.f32 %v577_v15, %v258_v32  ;;  %v627_v35 = vsub.f32 %v577_v15, %v218_v33 }
 0x279   :  { %v260_v36 = vsel %vm572_vm9, %v624_v34, -inf  ;;  %v220_v37 = vsel %vm210_vm10, %v627_v35, -inf }
 0x27a   :  { %v221_v38 = vmul.f32 1.442695, %v220_v37  ;;  %v298_v39 = vpop.xlane.xlu0 %297  ;;  %v238_v40 = vpop.xlane.xlu1 %237  ;;  %v261_v41 = vmul.f32 1.442695, %v260_v36 }
 0x27b   :  { %v636_v42 = vsub.f32 %v577_v15, %v298_v39  ;;  %v639_v43 = vsub.f32 %v577_v15, %v238_v40 }
 0x27c   :  { %392 = vpow2.f32 %v221_v38 }
 0x27d   :  { %v300_v44 = vsel %vm579_vm12, %v636_v42, -inf  ;;  %v240_v45 = vsel %vm583_vm13, %v639_v43, -inf  ;;  %394 = vpow2.f32 %v261_v41 }
 0x27e   :  { %v241_v46 = vmul.f32 1.442695, %v240_v45  ;;  %v278_v47 = vpop.xlane.xlu1 %277  ;;  %v301_v48 = vmul.f32 1.442695, %v300_v44 }
 0x27f   :  { %v648_v49 = vsub.f32 %v577_v15, %v278_v47 }
 0x280   :  { %396 = vpow2.f32 %v241_v46 }
 0x281   :  { %v280_v50 = vsel %vm603_vm0, %v648_v49, -inf  ;;  %398 = vpow2.f32 %v301_v48 }
 0x282   :  { %v281_v51 = vmul.f32 1.442695, %v280_v50  ;;  %v318_v52 = vpop.xlane.xlu1 %317 }
 0x283   :  { %v654_v53 = vsub.f32 %v577_v15, %v318_v52 }
 0x284   :  { %400 = vpow2.f32 %v281_v51 }
 0x285   :  { %v320_v54 = vsel %vm614_vm3, %v654_v53, -inf }
 0x286   :  { %v321_v55 = vmul.f32 1.442695, %v320_v54  ;;  %v393_v56 = vpop.eup %392 }
 0x287   :  { %v223_v57 = vsel %vm215_vm11, %v393_v56, 0.0  ;;  %v395_v58 = vpop.eup %394 }
 0x288   :  { %402 = vpow2.f32 %v321_v55  ;;  %224 = vadd.xlane.f32.xlu0 %v223_v57  ;;  %v263_v60 = vsel %vm215_vm11, %v395_v58, 0.0 }
 0x28a   :  { %v397_v59 = vpop.eup %396 }
 0x28b   :  { %v243_v61 = vsel %vm215_vm11, %v397_v59, 0.0  ;;  %v399_v62 = vpop.eup %398 }
 0x28c   :  { %264 = vadd.xlane.f32.xlu0 %v263_v60  ;;  %244 = vadd.xlane.f32.xlu1 %v243_v61  ;;  %v303_v3 = vsel %vm215_vm11, %v399_v62, 0.0 }
 0x28e   :  { %v401_v63 = vpop.eup %400 }
 0x28f   :  { %v283_v2 = vsel %vm215_vm11, %v401_v63, 0.0 }
 0x290   :  { %304 = vadd.xlane.f32.xlu0 %v303_v3  ;;  %284 = vadd.xlane.f32.xlu1 %v283_v2 }
 0x292   :  { %v403_v4 = vpop.eup %402 }
 0x293   :  { %v323_v0 = vsel %vm215_vm11, %v403_v4, 0.0 }
 0x294   :  { %324 = vadd.xlane.f32.xlu1 %v323_v0 }
 0x315   :  { %v225_v5 = vpop.xlane.xlu0 %224 }
 0x316   :  { %404 = vlog2.f32 %v225_v5 }
 0x319   :  { %v265_v6 = vpop.xlane.xlu0 %264  ;;  %v245_v7 = vpop.xlane.xlu1 %244 }
 0x31a   :  { %406 = vlog2.f32 %v265_v6 }
 0x31b   :  { %408 = vlog2.f32 %v245_v7 }
 0x31d   :  { %v305_v1 = vpop.xlane.xlu0 %304  ;;  %v285_v9 = vpop.xlane.xlu1 %284 }
 0x31e   :  { %410 = vlog2.f32 %v305_v1 }
 0x31f   :  { %412 = vlog2.f32 %v285_v9 }
 0x320   :  { %v405_v10 = vpop.eup %404 }
 0x321   :  { %v227_v11 = vmul.f32 0.6931472, %v405_v10  ;;  %v325_v12 = vpop.xlane.xlu1 %324 }
 0x322   :  { %414 = vlog2.f32 %v325_v12 }
 0x323   :  { %v228_v19 = vsub.f32 %v627_v35, %v227_v11 }
 0x324   :  { %v407_v13 = vpop.eup %406 }
 0x325   :  { %v409_v18 = vpop.eup %408  ;;  %v267_v20 = vmul.f32 0.6931472, %v407_v13  ;;  %v229_v26 = vsel %vm210_vm10, %v228_v19, %v577_v15 }
 0x326   :  { %v247_v21 = vmul.f32 0.6931472, %v409_v18 }
 0x327   :  { %v268_v27 = vsub.f32 %v624_v34, %v267_v20 }
 0x328   :  { %v411_v22 = vpop.eup %410  ;;  %v248_v23 = vsub.f32 %v639_v43, %v247_v21 }
 0x329   :  { %v413_v25 = vpop.eup %412  ;;  %v307_v29 = vmul.f32 0.6931472, %v411_v22 }
 0x32a   :  { %v249_v30 = vsel %vm583_vm13, %v248_v23, %v229_v26  ;;  %v287_v31 = vmul.f32 0.6931472, %v413_v25 }
 0x32b   :  { %v308_v33 = vsub.f32 %v636_v42, %v307_v29  ;;  %v269_v37 = vsel %vm572_vm9, %v268_v27, %v249_v30 }
 0x32c   :  { %v415_v32 = vpop.eup %414  ;;  %v288_v35 = vsub.f32 %v648_v49, %v287_v31 }
 0x32d   :  { %v327_v36 = vmul.f32 0.6931472, %v415_v32 }
 0x32e   :  { %v289_v8 = vsel %vm603_vm0, %v288_v35, %v269_v37 }
 0x32f   :  { %v328_v15 = vsub.f32 %v654_v53, %v327_v36  ;;  %v309_v17 = vsel %vm579_vm12, %v308_v33, %v289_v8 }
 0x331   :  { %v329_v34 = vsel %vm614_vm3, %v328_v15, %v309_v17 }
 0x332   :  { %330 = vst [vmem:[#allocation7] sm:$0x3] %v329_v34 }
 0x333   :  { %471 = shalt.err (!%p468_p6)
}
 0x334   :  { %s472_s20 = scalar_lea.hbm %s700_s4, 32 }
 0x335   :  { %p473_p7 = scmp.ne.s32.totalorder %s700_s4, %s472_s20  ;;  %p476_p8 = scmp.lt.u32.totalorder %s472_s20, %s700_s4 }
 0x337   :  { %p478_p9 = pnand %p476_p8, %p473_p7 }
 0x339   :  { %481 = shalt.err (!%p478_p9)
}
 0x33a   :  { %340 = dma.vmem_to_hbm [thread:$0]  %s338_s16, 32, %s700_s4, [#allocation4]  }
 0x33b   :  { %486 = dma.done.wait [#allocation4], 32  }
 0x33c   :  { %487 = vsyncadd [#allocation4], 4294967264 }
 0x33d   :  { %344 = vsyncpa [#allocation3], 1 }
 0x33e   :  { %345 = vsyncpa [#allocation6], 1 }
 0x33f   :  { %346 = vsyncpa [#allocation4], 1 }

</bundles_post_ra>
